<compile_context>
chip_gen: v7x
topology: tpu7x:2x2x1
jax: 0.10.0
libtpu: 0.0.40
codegen_flags: <defaults>
</compile_context>

<pallas_src>
import functools

import jax
import jax.numpy as jnp
from jax import lax
from jax.experimental import pallas as pl
from jax.experimental.pallas import tpu as pltpu


def _round_up(x, m):
    return (x + m - 1) // m * m


def _log_sigmoid(z):
    # numerically stable log(sigmoid(z)) = min(z, 0) - log1p(exp(-|z|))
    return jnp.minimum(z, 0.0) - jnp.log1p(jnp.exp(-jnp.abs(z)))


def skipgram_neg_kernel(x_ref, y_ref, neg_ref, w_hid_ref, w_out_t_ref,
                        out_ref, acc_ref, *, batch_size):
    """One batch tile: accumulate sum of per-row losses into SMEM scratch."""
    TB = x_ref.shape[0]          # batch tile (multiple of 8)
    K = neg_ref.shape[1]         # negatives per row (small, static)
    V = w_hid_ref.shape[0]       # padded vocab (multiple of 128 -> lane dense)
    f32 = jnp.float32
    pid = pl.program_id(0)

    @pl.when(pid == 0)
    def _init():
        acc_ref[0] = jnp.float32(0.0)

    iota_v = lax.broadcasted_iota(jnp.int32, (TB, V), 1)       # (TB, V) vocab ids

    # --- MXU matmul #1: gather hidden embeddings via one-hot --------------
    onehot_x = (iota_v == x_ref[...]).astype(f32)              # (TB, V)
    eh = jnp.dot(onehot_x, w_hid_ref[...],
                 preferred_element_type=f32)                   # (TB, D)

    # --- MXU matmul #2: all scores at once, lane-dense output -------------
    # G[b, v] = <eh_b, W_output_v>
    g = jnp.dot(eh, w_out_t_ref[...],
                preferred_element_type=f32)                    # (TB, V)

    zeros = jnp.zeros_like(g)                                  # hoisted (no per-iter broadcast)

    # positive_score_b = G[b, y_b]
    pos = jnp.sum(jnp.where(iota_v == y_ref[...], g, zeros),
                  axis=-1, keepdims=True)                      # (TB, 1)

    # negative_score_b = -sum_k G[b, neg_bk]   (fused; no (TB,V) counts buffer)
    neg_idx = neg_ref[...]                                     # (TB, K)
    neg_acc = jnp.zeros((TB, 1), f32)
    for k in range(K):                                         # K small & static
        neg_acc = neg_acc + jnp.sum(
            jnp.where(iota_v == neg_idx[:, k:k + 1], g, zeros),
            axis=-1, keepdims=True)
    neg_score = -neg_acc                                       # (TB, 1)

    loss = _log_sigmoid(pos) + _log_sigmoid(neg_score)         # (TB, 1)

    # mask padded batch rows out of the mean
    row = pid * TB + lax.broadcasted_iota(jnp.int32, (TB, 1), 0)
    loss = jnp.where(row < batch_size, loss, 0.0)

    acc_ref[0] += jnp.sum(loss)

    @pl.when(pid == pl.num_programs(0) - 1)
    def _finalize():
        out_ref[0, 0] = -acc_ref[0] / jnp.float32(batch_size)


def skipgram_neg_sampling(x, y, neg, w_hidden, w_output, *, block_b=None):
    """Scalar loss -mean(logsigmoid(pos) + logsigmoid(neg)) (PyTorch forward)."""
    B = x.shape[0]
    K = neg.shape[1]
    V, D = w_hidden.shape

    # Pad vocab to a multiple of 128 so the (B, V) score matmul output is
    # lane-dense (zero rows are never selected by any index).
    V_pad = _round_up(V, 128)
    if V_pad != V:
        vpad = ((0, V_pad - V), (0, 0))
        w_hidden_p = jnp.pad(w_hidden, vpad)
        w_output_p = jnp.pad(w_output, vpad)
    else:
        w_hidden_p, w_output_p = w_hidden, w_output
    w_out_t = w_output_p.T                       # (D, V_pad) — layout plumbing

    # Batch tiling (rows per grid step; must be a multiple of 8 sublanes).
    if block_b is None:
        block_b = min(128, _round_up(B, 8))
    block_b = max(8, _round_up(block_b, 8))
    B_pad = _round_up(B, block_b)
    if B_pad != B:
        bpad = ((0, B_pad - B), (0, 0))
        x = jnp.pad(x, bpad)
        y = jnp.pad(y, bpad)
        neg = jnp.pad(neg, bpad)

    grid = (B_pad // block_b,)

    kernel = functools.partial(skipgram_neg_kernel, batch_size=B)

    table_bytes = (w_hidden_p.size + w_out_t.size) * 4
    vmem_limit = int(min(max(32 << 20, 2 * table_bytes + (8 << 20)), 100 << 20))

    out = pl.pallas_call(
        kernel,
        out_shape=jax.ShapeDtypeStruct((1, 1), jnp.float32),
        grid_spec=pltpu.PrefetchScalarGridSpec(
            num_scalar_prefetch=0,
            grid=grid,
            in_specs=[
                pl.BlockSpec((block_b, 1), lambda i: (i, 0)),      # x
                pl.BlockSpec((block_b, 1), lambda i: (i, 0)),      # y
                pl.BlockSpec((block_b, K), lambda i: (i, 0)),      # negatives
                pl.BlockSpec((V_pad, D), lambda i: (0, 0)),        # W_hidden (resident)
                pl.BlockSpec((D, V_pad), lambda i: (0, 0)),        # W_output^T (resident)
            ],
            out_specs=pl.BlockSpec(memory_space=pltpu.MemorySpace.SMEM),
            scratch_shapes=[pltpu.SMEM((1,), jnp.float32)],        # running loss sum
        ),
        compiler_params=pltpu.CompilerParams(
            dimension_semantics=("arbitrary",),   # sequential: SMEM accumulator
            vmem_limit_bytes=vmem_limit,
        ),
    )(x, y, neg, w_hidden_p, w_out_t)
    return out[0, 0]


def reference_forward(x, y, neg, w_hidden, w_output):
    # Pure-JAX mirror of the PyTorch forward for verification.
    eh = w_hidden[x[:, 0]]                                               # (B, D)
    et = w_output[y[:, 0]]                                               # (B, D)
    en = -w_output[neg]                                                  # (B, K, D)
    pos = jnp.sum(et * eh, axis=-1, keepdims=True)                       # (B, 1)
    neg_s = jnp.sum(jnp.einsum('bkd,bd->bk', en, eh), axis=1, keepdims=True)
    loss = jax.nn.log_sigmoid(pos) + jax.nn.log_sigmoid(neg_s)
    return -jnp.mean(loss)


if __name__ == "__main__":
    VOCAB, EMBED = 200, 32          # non-multiple of 128 -> exercises vocab padding
    B, K = 12, 5                    # non-multiple of 8  -> exercises batch masking

    key = jax.random.PRNGKey(0)
    k_wh, k_wo, k_x, k_y, k_n = jax.random.split(key, 5)

    # nn.Embedding default init: N(0, 1)
    w_hidden = jax.random.normal(k_wh, (VOCAB, EMBED), dtype=jnp.float32)
    w_output = jax.random.normal(k_wo, (VOCAB, EMBED), dtype=jnp.float32)

    x = jax.random.randint(k_x, (B, 1), 0, VOCAB, dtype=jnp.int32)
    y = jax.random.randint(k_y, (B, 1), 0, VOCAB, dtype=jnp.int32)
    neg = jax.random.randint(k_n, (B, K), 0, VOCAB, dtype=jnp.int32)

    loss = skipgram_neg_sampling(x, y, neg, w_hidden, w_output, block_b=8)
    jax.block_until_ready(loss)

    ref = reference_forward(x, y, neg, w_hidden, w_output)
    assert jnp.allclose(loss, ref, atol=1e-4, rtol=1e-4), (loss, ref)

    print("KERNEL_OK")
</pallas_src>

<mosaic_0001>
module attributes {stable_mosaic.version = 11 : i64} {
  func.func @skipgram_neg_kernel(%arg0: i32, %arg1: memref<8x1xi32, #tpu.memory_space<vmem>>, %arg2: memref<8x1xi32, #tpu.memory_space<vmem>>, %arg3: memref<8x5xi32, #tpu.memory_space<vmem>>, %arg4: memref<256x32xf32, #tpu.memory_space<vmem>>, %arg5: memref<32x256xf32, #tpu.memory_space<vmem>>, %arg6: memref<1x1xf32, #tpu.memory_space<smem>>, %arg7: memref<1xf32, #tpu.memory_space<smem>>) attributes {dimension_semantics = [#tpu.dimension_semantics<arbitrary>], iteration_bounds = array<i64: 2>, scalar_prefetch = 0 : i64, scratch_operands = 1 : i64, tpu.core_type = #tpu.core_type<tc>, window_params = [{transform_indices = @transform_0, window_bounds = array<i64: 8, 1>}, {transform_indices = @transform_1, window_bounds = array<i64: 8, 1>}, {transform_indices = @transform_2, window_bounds = array<i64: 8, 5>}, {pipeline_mode = #tpu.pipeline_mode<synchronous>, transform_indices = @transform_3, window_bounds = array<i64: 256, 32>}, {pipeline_mode = #tpu.pipeline_mode<synchronous>, transform_indices = @transform_4, window_bounds = array<i64: 32, 256>}, {transform_indices = @transform_5, window_bounds = array<i64: 1, 1>}]} {
    %c0_i32 = arith.constant 0 : i32
    %0 = arith.cmpi eq, %arg0, %c0_i32 : i32
    %1 = arith.extui %0 : i1 to i32
    %c0_i32_0 = arith.constant 0 : i32
    %2 = arith.cmpi ne, %1, %c0_i32_0 : i32
    scf.if %2 {
      %cst_29 = arith.constant 0.000000e+00 : f32
      %c0_30 = arith.constant 0 : index
      %94 = memref.load %arg7[%c0_30] : memref<1xf32, #tpu.memory_space<smem>>
      memref.store %cst_29, %arg7[%c0_30] : memref<1xf32, #tpu.memory_space<smem>>
    } else {
    }
    %3 = tpu.iota {dimensions = array<i32: 1>} : vector<8x256xi32>
    %c0 = arith.constant 0 : index
    %c0_1 = arith.constant 0 : index
    %4 = vector.load %arg1[%c0, %c0_1] : memref<8x1xi32, #tpu.memory_space<vmem>>, vector<8x1xi32>
    %5 = vector.broadcast %4 : vector<8x1xi32> to vector<8x256xi32>
    %6 = arith.cmpi eq, %3, %5 : vector<8x256xi32>
    %7 = arith.extui %6 : vector<8x256xi1> to vector<8x256xi32>
    %8 = arith.sitofp %7 : vector<8x256xi32> to vector<8x256xf32>
    %c0_2 = arith.constant 0 : index
    %c0_3 = arith.constant 0 : index
    %9 = vector.load %arg4[%c0_2, %c0_3] : memref<256x32xf32, #tpu.memory_space<vmem>>, vector<256x32xf32>
    %cst = arith.constant dense<0.000000e+00> : vector<8x32xf32>
    %10 = tpu.matmul %8, %9, %cst {dimension_numbers = #tpu.dot_dimension_numbers<[1], [0], [0], [1], [0, 0, 1, 1], [], []>} : vector<8x256xf32>, vector<256x32xf32>, vector<8x32xf32> -> vector<8x32xf32>
    %c0_4 = arith.constant 0 : index
    %c0_5 = arith.constant 0 : index
    %11 = vector.load %arg5[%c0_4, %c0_5] : memref<32x256xf32, #tpu.memory_space<vmem>>, vector<32x256xf32>
    %cst_6 = arith.constant dense<0.000000e+00> : vector<8x256xf32>
    %12 = tpu.matmul %10, %11, %cst_6 {dimension_numbers = #tpu.dot_dimension_numbers<[1], [0], [0], [1], [0, 0, 1, 1], [], []>} : vector<8x32xf32>, vector<32x256xf32>, vector<8x256xf32> -> vector<8x256xf32>
    %cst_7 = arith.constant 0.000000e+00 : f32
    %13 = vector.broadcast %cst_7 : f32 to vector<8x256xf32>
    %c0_8 = arith.constant 0 : index
    %c0_9 = arith.constant 0 : index
    %14 = vector.load %arg2[%c0_8, %c0_9] : memref<8x1xi32, #tpu.memory_space<vmem>>, vector<8x1xi32>
    %15 = vector.broadcast %14 : vector<8x1xi32> to vector<8x256xi32>
    %16 = arith.cmpi eq, %3, %15 : vector<8x256xi32>
    %17 = arith.select %16, %12, %13 : vector<8x256xi1>, vector<8x256xf32>
    %cst_10 = arith.constant dense<0.000000e+00> : vector<8xf32>
    %18 = vector.multi_reduction <add>, %17, %cst_10 [1] : vector<8x256xf32> to vector<8xf32>
    %19 = vector.shape_cast %18 : vector<8xf32> to vector<8x1xf32>
    %c0_11 = arith.constant 0 : index
    %c0_12 = arith.constant 0 : index
    %20 = vector.load %arg3[%c0_11, %c0_12] : memref<8x5xi32, #tpu.memory_space<vmem>>, vector<8x5xi32>
    %cst_13 = arith.constant 0.000000e+00 : f32
    %21 = vector.broadcast %cst_13 : f32 to vector<8x1xf32>
    %22 = vector.extract_strided_slice %20 {offsets = [0, 0], sizes = [8, 1], strides = [1, 1]} : vector<8x5xi32> to vector<8x1xi32>
    %23 = vector.broadcast %22 : vector<8x1xi32> to vector<8x256xi32>
    %24 = arith.cmpi eq, %3, %23 : vector<8x256xi32>
    %25 = arith.select %24, %12, %13 : vector<8x256xi1>, vector<8x256xf32>
    %cst_14 = arith.constant dense<0.000000e+00> : vector<8xf32>
    %26 = vector.multi_reduction <add>, %25, %cst_14 [1] : vector<8x256xf32> to vector<8xf32>
    %27 = vector.shape_cast %26 : vector<8xf32> to vector<8x1xf32>
    %28 = arith.addf %21, %27 : vector<8x1xf32>
    %29 = vector.extract_strided_slice %20 {offsets = [0, 1], sizes = [8, 1], strides = [1, 1]} : vector<8x5xi32> to vector<8x1xi32>
    %30 = vector.broadcast %29 : vector<8x1xi32> to vector<8x256xi32>
    %31 = arith.cmpi eq, %3, %30 : vector<8x256xi32>
    %32 = arith.select %31, %12, %13 : vector<8x256xi1>, vector<8x256xf32>
    %cst_15 = arith.constant dense<0.000000e+00> : vector<8xf32>
    %33 = vector.multi_reduction <add>, %32, %cst_15 [1] : vector<8x256xf32> to vector<8xf32>
    %34 = vector.shape_cast %33 : vector<8xf32> to vector<8x1xf32>
    %35 = arith.addf %28, %34 : vector<8x1xf32>
    %36 = vector.extract_strided_slice %20 {offsets = [0, 2], sizes = [8, 1], strides = [1, 1]} : vector<8x5xi32> to vector<8x1xi32>
    %37 = vector.broadcast %36 : vector<8x1xi32> to vector<8x256xi32>
    %38 = arith.cmpi eq, %3, %37 : vector<8x256xi32>
    %39 = arith.select %38, %12, %13 : vector<8x256xi1>, vector<8x256xf32>
    %cst_16 = arith.constant dense<0.000000e+00> : vector<8xf32>
    %40 = vector.multi_reduction <add>, %39, %cst_16 [1] : vector<8x256xf32> to vector<8xf32>
    %41 = vector.shape_cast %40 : vector<8xf32> to vector<8x1xf32>
    %42 = arith.addf %35, %41 : vector<8x1xf32>
    %43 = vector.extract_strided_slice %20 {offsets = [0, 3], sizes = [8, 1], strides = [1, 1]} : vector<8x5xi32> to vector<8x1xi32>
    %44 = vector.broadcast %43 : vector<8x1xi32> to vector<8x256xi32>
    %45 = arith.cmpi eq, %3, %44 : vector<8x256xi32>
    %46 = arith.select %45, %12, %13 : vector<8x256xi1>, vector<8x256xf32>
    %cst_17 = arith.constant dense<0.000000e+00> : vector<8xf32>
    %47 = vector.multi_reduction <add>, %46, %cst_17 [1] : vector<8x256xf32> to vector<8xf32>
    %48 = vector.shape_cast %47 : vector<8xf32> to vector<8x1xf32>
    %49 = arith.addf %42, %48 : vector<8x1xf32>
    %50 = vector.extract_strided_slice %20 {offsets = [0, 4], sizes = [8, 1], strides = [1, 1]} : vector<8x5xi32> to vector<8x1xi32>
    %51 = vector.broadcast %50 : vector<8x1xi32> to vector<8x256xi32>
    %52 = arith.cmpi eq, %3, %51 : vector<8x256xi32>
    %53 = arith.select %52, %12, %13 : vector<8x256xi1>, vector<8x256xf32>
    %cst_18 = arith.constant dense<0.000000e+00> : vector<8xf32>
    %54 = vector.multi_reduction <add>, %53, %cst_18 [1] : vector<8x256xf32> to vector<8xf32>
    %55 = vector.shape_cast %54 : vector<8xf32> to vector<8x1xf32>
    %56 = arith.addf %49, %55 : vector<8x1xf32>
    %cst_19 = arith.constant 0.000000e+00 : f32
    %57 = vector.broadcast %cst_19 : f32 to vector<8x1xf32>
    %58 = arith.subf %57, %56 : vector<8x1xf32>
    %cst_20 = arith.constant 0.000000e+00 : f32
    %59 = vector.broadcast %cst_20 : f32 to vector<8x1xf32>
    %60 = arith.minimumf %19, %59 : vector<8x1xf32>
    %61 = math.absf %19 : vector<8x1xf32>
    %cst_21 = arith.constant 0.000000e+00 : f32
    %62 = vector.broadcast %cst_21 : f32 to vector<8x1xf32>
    %63 = arith.subf %62, %61 : vector<8x1xf32>
    %64 = math.exp %63 : vector<8x1xf32>
    %65 = math.log1p %64 : vector<8x1xf32>
    %66 = arith.subf %60, %65 : vector<8x1xf32>
    %cst_22 = arith.constant 0.000000e+00 : f32
    %67 = vector.broadcast %cst_22 : f32 to vector<8x1xf32>
    %68 = arith.minimumf %58, %67 : vector<8x1xf32>
    %69 = math.absf %58 : vector<8x1xf32>
    %cst_23 = arith.constant 0.000000e+00 : f32
    %70 = vector.broadcast %cst_23 : f32 to vector<8x1xf32>
    %71 = arith.subf %70, %69 : vector<8x1xf32>
    %72 = math.exp %71 : vector<8x1xf32>
    %73 = math.log1p %72 : vector<8x1xf32>
    %74 = arith.subf %68, %73 : vector<8x1xf32>
    %75 = arith.addf %66, %74 : vector<8x1xf32>
    %c8_i32 = arith.constant 8 : i32
    %76 = arith.muli %arg0, %c8_i32 : i32
    %77 = tpu.iota {dimensions = array<i32: 0>} : vector<8x1xi32>
    %78 = vector.broadcast %76 : i32 to vector<8x1xi32>
    %79 = arith.addi %78, %77 : vector<8x1xi32>
    %c12_i32 = arith.constant 12 : i32
    %80 = vector.broadcast %c12_i32 : i32 to vector<8x1xi32>
    %81 = arith.cmpi slt, %79, %80 : vector<8x1xi32>
    %cst_24 = arith.constant 0.000000e+00 : f32
    %82 = vector.broadcast %cst_24 : f32 to vector<8x1xf32>
    %83 = arith.select %81, %75, %82 : vector<8x1xi1>, vector<8x1xf32>
    %c0_25 = arith.constant 0 : index
    %84 = memref.load %arg7[%c0_25] : memref<1xf32, #tpu.memory_space<smem>>
    %85 = vector.shape_cast %83 : vector<8x1xf32> to vector<1x8x1xf32>
    %cst_26 = arith.constant dense<0.000000e+00> : vector<1xf32>
    %86 = vector.multi_reduction <add>, %85, %cst_26 [1, 2] : vector<1x8x1xf32> to vector<1xf32>
    %87 = vector.shape_cast %86 : vector<1xf32> to vector<1x1x1xf32>
    %88 = vector.extract %87[0, 0, 0] : f32 from vector<1x1x1xf32>
    %89 = arith.addf %84, %88 : f32
    %c0_27 = arith.constant 0 : index
    %90 = memref.load %arg7[%c0_27] : memref<1xf32, #tpu.memory_space<smem>>
    memref.store %89, %arg7[%c0_27] : memref<1xf32, #tpu.memory_space<smem>>
    %c1_i32 = arith.constant 1 : i32
    %91 = arith.cmpi eq, %arg0, %c1_i32 : i32
    %92 = arith.extui %91 : i1 to i32
    %c0_i32_28 = arith.constant 0 : i32
    %93 = arith.cmpi ne, %92, %c0_i32_28 : i32
    scf.if %93 {
      %c0_29 = arith.constant 0 : index
      %94 = memref.load %arg7[%c0_29] : memref<1xf32, #tpu.memory_space<smem>>
      %cst_30 = arith.constant 0.000000e+00 : f32
      %95 = arith.subf %cst_30, %94 : f32
      %cst_31 = arith.constant 1.200000e+01 : f32
      %96 = arith.divf %95, %cst_31 : f32
      %c0_32 = arith.constant 0 : index
      %c0_33 = arith.constant 0 : index
      %97 = memref.load %arg6[%c0_32, %c0_33] : memref<1x1xf32, #tpu.memory_space<smem>>
      memref.store %96, %arg6[%c0_32, %c0_33] : memref<1x1xf32, #tpu.memory_space<smem>>
    } else {
    }
    return
  }
  func.func @transform_0(%arg0: i32) -> (i32, i32) {
    %c0_i32 = arith.constant 0 : i32
    %c0_i32_0 = arith.constant 0 : i32
    return %arg0, %c0_i32 : i32, i32
  }
  func.func @transform_1(%arg0: i32) -> (i32, i32) {
    %c0_i32 = arith.constant 0 : i32
    %c0_i32_0 = arith.constant 0 : i32
    return %arg0, %c0_i32 : i32, i32
  }
  func.func @transform_2(%arg0: i32) -> (i32, i32) {
    %c0_i32 = arith.constant 0 : i32
    %c0_i32_0 = arith.constant 0 : i32
    return %arg0, %c0_i32 : i32, i32
  }
  func.func @transform_3(%arg0: i32) -> (i32, i32) {
    %c0_i32 = arith.constant 0 : i32
    %c0_i32_0 = arith.constant 0 : i32
    %c0_i32_1 = arith.constant 0 : i32
    return %c0_i32, %c0_i32_0 : i32, i32
  }
  func.func @transform_4(%arg0: i32) -> (i32, i32) {
    %c0_i32 = arith.constant 0 : i32
    %c0_i32_0 = arith.constant 0 : i32
    %c0_i32_1 = arith.constant 0 : i32
    return %c0_i32, %c0_i32_0 : i32, i32
  }
  func.func @transform_5(%arg0: i32) -> (i32, i32) {
    %c0_i32 = arith.constant 0 : i32
    %c0_i32_0 = arith.constant 0 : i32
    %c0_i32_1 = arith.constant 0 : i32
    return %c0_i32, %c0_i32_0 : i32, i32
  }
}

</mosaic_0001>

<bundles_post_ra>
// kernel: tpu_custom_call.1
= control target key start
LH: loop header
LB: loop body
LE: loop exit
PB: predicated region body
PF: predicated region fallthrough
CT: control target
= control target key end

     0   :  { %10 = vsyncpa [#allocation4], 0  ;;  %s850_s18 = smov 0   ;;  %s1062_s0 = inlined_call_operand.vmem [shape: s32[16,1], index: 0, kind: input, shape index: {}]   ;;  %s1063_s1 = inlined_call_operand.vmem [shape: s32[16,1], index: 1, kind: input, shape index: {}]   ;;  %s1064_s2 = inlined_call_operand.vmem [shape: s32[16,5], index: 2, kind: input, shape index: {}]   ;;  %s1065_s3 = inlined_call_operand.vmem [shape: f32[256,32], index: 3, kind: input, shape index: {}]   ;;  %s1066_s4 = inlined_call_operand.vmem [shape: f32[32,256], index: 4, kind: input, shape index: {}]   ;;  %s1067_s5 = inlined_call_operand.hbm [shape: f32[1,1], index: 5, kind: output, shape index: {}]  }
   0x1 LB: > { %s856_s19 = sadd.s32 4294967295, %s809_s18   ;;  %p650_p0 = scmp.ge.s32.totalorder %s809_s18, 1  ;;  %s809_s18 = sphi %s850_s18, %s16_s18  }
   0x2   : > { %p200_p1 = scmp.lt.s32.totalorder %s809_s18, 3 }
   0x4   : > { %p201_p2 = pnand %p650_p0, %p200_p1 }
   0x5   : > { %p230_p3 = scmp.lt.s32.totalorder (!%p201_p2), %s856_s19, 1  ;;  %v277_v0 = vld [vmem:[%s1065_s3 + $0x80] sm:$0xff] (!%p201_p2)  ;;  %v278_v1 = vld [vmem:[%s1065_s3 + $0x88] sm:$0xff] (!%p201_p2)  ;;  %v811_v3 = vmov (!%p201_p2), 0   ;;  %v279_v6 = vld [vmem:[%s1065_s3 + $0x90] sm:$0xff] (!%p201_p2)  ;;  %v248_v57 = vlaneseq (!%p201_p2)  ;;  %v812_v61 = vmov (!%p201_p2), 1.0  }
   0x6   : > { %204 = sbr.rel (%p201_p2) target bundleno = 992 (0x3e0), region = 40  ;;  %v261_v2 = vld [vmem:[%s1065_s3] sm:$0xff] (!%p201_p2)  ;;  %772 = vset.pattern.permute.xlu0 (!%p201_p2), %v811_v3  ;;  %v701_v4 = vpack.c.bf16 (!%p201_p2), %v278_v1, %v277_v0  ;;  %v262_v5 = vld [vmem:[%s1065_s3 + $0x8] sm:$0xff] (!%p201_p2)  ;;  %v280_v7 = vld [vmem:[%s1065_s3 + $0x98] sm:$0xff] (!%p201_p2)  ;;  %vm371_vm2 = vcmask (!%p201_p2), 261120   ;;  %p751_p4 = scmp.eq.s32.totalorder (!%p201_p2), %s856_s19, 0 }
   0x7   : > { %v703_v8 = vpack.c.bf16 (!%p201_p2), %v262_v5, %v261_v2  ;;  %v705_v9 = vpack.c.bf16 (!%p201_p2), %v280_v7, %v279_v6  ;;  %v263_v10 = vld [vmem:[%s1065_s3 + $0x10] sm:$0xff] (!%p201_p2)  ;;  %v264_v11 = vld [vmem:[%s1065_s3 + $0x18] sm:$0xff] (!%p201_p2)  ;;  %v281_v12 = vld [vmem:[%s1065_s3 + $0xa0] sm:$0xff] (!%p201_p2)  ;;  %v985_v58 = vand.u32 (!%p201_p2), 127, %v248_v57  ;;  %v813_v5 = vmov (!%p201_p2), 0.0   ;;  %s818_s22 = smov (!%p201_p2), 0.0  }
   0x8   : > { %702 = vmatprep.subr.bf16.mxu0 (!%p201_p2), %v701_v4  ;;  %v282_v13 = vld [vmem:[%s1065_s3 + $0xa8] sm:$0xff] (!%p201_p2)  ;;  %v707_v14 = vpack.c.bf16 (!%p201_p2), %v264_v11, %v263_v10  ;;  %v265_v16 = vld [vmem:[%s1065_s3 + $0x20] sm:$0xff] (!%p201_p2)  ;;  %v283_v19 = vld [vmem:[%s1065_s3 + $0xb0] sm:$0xff] (!%p201_p2)  ;;  %439 = vmatprep.mubr.f32.mxu1 (!%p201_p2), %v813_v5  ;;  %v814_v6 = vmov (!%p201_p2), 1   ;;  %v815_v7 = vmov (!%p201_p2), 3   ;;  %p752_p5 = scmp.eq.s32.totalorder (!%p201_p2), %s856_s19, 1 }
   0x9   : > { %704 = vmatpush3.bf16.msra.mxu0 (!%p201_p2), %v703_v8  ;;  %v709_v15 = vpack.c.bf16 (!%p201_p2), %v282_v13, %v281_v12  ;;  %v266_v17 = vld [vmem:[%s1065_s3 + $0x28] sm:$0xff] (!%p201_p2)  ;;  %v284_v20 = vld [vmem:[%s1065_s3 + $0xb8] sm:$0xff] (!%p201_p2)  ;;  %v267_v24 = vld [vmem:[%s1065_s3 + $0x30] sm:$0xff] (!%p201_p2)  ;;  %v988_v59 = vadd.s32 (!%p201_p2), 128, %v985_v58  ;;  %773 = vset.pattern.permute.xlu1 (!%p201_p2), %v814_v6  ;;  %v816_v8 = vmov (!%p201_p2), 2   ;;  %s787_s30 = scalar_lea.hbm (!%p201_p2), %s1067_s5, 16 }
   0xa   : > { %706 = vmatprep.subr.bf16.mxu0 (!%p201_p2), %v705_v9  ;;  %v711_v22 = vpack.c.bf16 (!%p201_p2), %v266_v17, %v265_v16  ;;  %v713_v23 = vpack.c.bf16 (!%p201_p2), %v284_v20, %v283_v19  ;;  %v268_v25 = vld [vmem:[%s1065_s3 + $0x38] sm:$0xff] (!%p201_p2)  ;;  %v285_v26 = vld [vmem:[%s1065_s3 + $0xc0] sm:$0xff] (!%p201_p2)  ;;  %v286_v27 = vld [vmem:[%s1065_s3 + $0xc8] sm:$0xff] (!%p201_p2)  ;;  %v817_v9 = vmov (!%p201_p2), 4   ;;  %p788_p6 = scmp.ne.s32.totalorder (!%p201_p2), %s1067_s5, %s787_s30  ;;  %p793_p9 = scmp.lt.u32.totalorder (!%p201_p2), %s787_s30, %s1067_s5 }
   0xb   : > { %v364_v28 = vld [vmem:[%s1066_s4 + $0x8] sm:$0xff] (!%p201_p2)  ;;  %v366_v29 = vld [vmem:[%s1066_s4 + $0x18] sm:$0xff] (!%p201_p2)  ;;  %v715_v30 = vpack.c.bf16 (!%p201_p2), %v268_v25, %v267_v24  ;;  %v363_v32 = vld [vmem:[%s1066_s4] sm:$0xff] (!%p201_p2)  ;;  %v717_v34 = vpack.c.bf16 (!%p201_p2), %v286_v27, %v285_v26 }
   0xc   : > { %v733_v31 = vpack.c.bf16 (!%p201_p2), %v366_v29, %v364_v28  ;;  %v365_v33 = vld [vmem:[%s1066_s4 + $0x10] sm:$0xff] (!%p201_p2)  ;;  %v269_v35 = vld [vmem:[%s1065_s3 + $0x40] sm:$0xff] (!%p201_p2)  ;;  %v270_v36 = vld [vmem:[%s1065_s3 + $0x48] sm:$0xff] (!%p201_p2)  ;;  %p789_p7 = pnand (!%p201_p2), %p788_p6, %p752_p5 }
   0xd   : > { %s231_s7 = scalar_select %p230_p3, %s856_s19, 1  ;;  %708 = vmatpush3.bf16.msra.mxu0 %v707_v14  ;;  %v735_v37 = vpack.c.bf16 %v365_v33, %v363_v32  ;;  %v287_v38 = vld [vmem:[%s1065_s3 + $0xd0] sm:$0xff]  ;;  %v288_v39 = vld [vmem:[%s1065_s3 + $0xd8] sm:$0xff]  ;;  %v719_v40 = vpack.c.bf16 %v270_v36, %v269_v35  ;;  %v289_v44 = vld [vmem:[%s1065_s3 + $0xe0] sm:$0xff] }
   0xe   : > { %710 = vmatprep.subr.bf16.mxu0 %v709_v15  ;;  %734 = vmatprep.subr.bf16.mxu1 %v733_v31  ;;  %v721_v41 = vpack.c.bf16 %v288_v39, %v287_v38  ;;  %v271_v42 = vld [vmem:[%s1065_s3 + $0x50] sm:$0xff]  ;;  %v272_v43 = vld [vmem:[%s1065_s3 + $0x58] sm:$0xff]  ;;  %v290_v45 = vld [vmem:[%s1065_s3 + $0xe8] sm:$0xff]  ;;  %744 = sst [smem:[#allocation2]] (%p751_p4), %s818_s22  ;;  %p790_p8 = pneg %p789_p7 }
   0xf   : > { %s893_s16 = sshll.u32 %s231_s7, 3  ;;  %736 = vmatpush1.bf16.msra.mxu1 %v735_v37  ;;  %v723_v46 = vpack.c.bf16 %v272_v43, %v271_v42  ;;  %v725_v47 = vpack.c.bf16 %v290_v45, %v289_v44  ;;  %v273_v48 = vld [vmem:[%s1065_s3 + $0x60] sm:$0xff]  ;;  %v274_v49 = vld [vmem:[%s1065_s3 + $0x68] sm:$0xff]  ;;  %v291_v50 = vld [vmem:[%s1065_s3 + $0xf0] sm:$0xff]  ;;  %s552_s23 = sld [smem:[#allocation2]] }
  0x10   : > { %s233_s21 = scalar_lea.vmem %s1062_s0, %s893_s16  ;;  %s241_s24 = scalar_lea.vmem %s1064_s2, %s893_s16  ;;  %v292_v51 = vld [vmem:[%s1065_s3 + $0xf8] sm:$0xff]  ;;  %v727_v52 = vpack.c.bf16 %v274_v49, %v273_v48  ;;  %v275_v54 = vld [vmem:[%s1065_s3 + $0x70] sm:$0xff]  ;;  %v368_v62 = vld [vmem:[%s1066_s4 + $0x28] sm:$0xff] }
  0x11   : > { %v251_v18 = vld [vmem:[%s233_s21] sm:$0xff]  ;;  %712 = vmatpush3.bf16.msra.mxu0 %v711_v22  ;;  %v729_v53 = vpack.c.bf16 %v292_v51, %v291_v50  ;;  %v276_v55 = vld [vmem:[%s1065_s3 + $0x78] sm:$0xff]  ;;  %v369_v2 = vld [vmem:[%s1066_s4 + $0x30] sm:$0xff]  ;;  %s237_s21 = scalar_lea.vmem %s1063_s1, %s893_s16  ;;  %s660_s16 = sshll.u32 %s856_s19, 3 }
  0x12   : > { %253 = vperm.xlu0 %772, %v251_v18   ;;  %v915_v21 = vld [vmem:[%s241_s24] sm:$0xff]  ;;  %714 = vmatprep.subr.bf16.mxu0 %v713_v23  ;;  %v731_v56 = vpack.c.bf16 %v276_v55, %v275_v54  ;;  %v370_v63 = vld [vmem:[%s1066_s4 + $0x38] sm:$0xff]  ;;  %v548_v6 = vstv %s660_s16  ;;  %p795_p10 = pnand %p793_p9, %p790_p8 }
  0x13   : > { %v737_v0 = vpack.c.bf16 %v370_v63, %v368_v62  ;;  %v367_v1 = vld [vmem:[%s1066_s4 + $0x20] sm:$0xff]  ;;  %470 = vperm.xlu1 %773, %v915_v21  }
  0x14   : > { %v739_v4 = vpack.c.bf16 %v369_v2, %v367_v1  ;;  %v446_v10 = vld [vmem:[%s237_s21] sm:$0xff]  ;;  %v547_v2 = vshrl.u32 %v248_v57, 7 }
  0x15   : > { %716 = vmatpush3.bf16.msra.mxu0 %v715_v30  ;;  %738 = vmatprep.subr.bf16.mxu1 %v737_v0 }
  0x16   : > { %459 = vperm.xlu0 %772, %v915_v21   ;;  %718 = vmatprep.subr.bf16.mxu0 %v717_v34 }
  0x17   : > { %740 = vmatpush1.bf16.msra.mxu1 %v739_v4  ;;  %774 = vset.pattern.permute.xlu1 %v816_v8 }
  0x18   : > { %481 = vperm.xlu1 %774, %v915_v21  }
  0x19   : > { %720 = vmatpush3.bf16.msra.mxu0 %v719_v40 }
  0x1a   : > { %722 = vmatprep.subr.bf16.mxu0 %v721_v41  ;;  %775 = vset.pattern.permute.xlu0 %v815_v7 }
  0x1b   : > { %492 = vperm.xlu0 %775, %v915_v21  }
  0x1c   : > { %776 = vset.pattern.permute.xlu1 %v817_v9 }
  0x1d   : > { %724 = vmatpush3.bf16.msra.mxu0 %v723_v46  ;;  %503 = vperm.xlu1 %776, %v915_v21  }
  0x1e   : > { %726 = vmatprep.subr.bf16.mxu0 %v725_v47 }
  0x1f   : > { %778 = vset.pattern.permute.xlu0 %v817_v9 }
  0x21   : > { %728 = vmatpush3.bf16.msra.mxu0 %v727_v52  ;;  %777 = vset.pattern.permute.xlu1 %v811_v3 }
  0x22   : > { %730 = vmatprep.subr.bf16.mxu0 %v729_v53  ;;  %448 = vperm.xlu1 %777, %v446_v10  }
  0x25   : > { %732 = vmatpush3.bf16.msra.mxu0 %v731_v56 }
  0x91   : > { %v254_v60 = vpop.permute.xlu0 %253 }
  0x92   : > { %vm255_vm0 = vcmp.eq.s32.totalorder %v985_v58, %v254_v60  ;;  %vm256_vm1 = vcmp.eq.s32.totalorder %v988_v59, %v254_v60  ;;  %v471_v14 = vpop.permute.xlu1 %470 }
  0x93   : > { %657 = vmatprep.mubr.msk.f32.mxu0 %vm256_vm1, %v812_v61  ;;  %vm472_vm4 = vcmp.eq.s32.totalorder %v985_v58, %v471_v14  ;;  %vm473_vm8 = vcmp.eq.s32.totalorder %v988_v59, %v471_v14 }
  0x94   : > { %658 = vmatmul.mubr.msk.f32.vlgmr.msra.gmra.mrb[0].mxu0 %vm255_vm0, %v812_v61 }
  0x95   : > { %v460_v17 = vpop.permute.xlu0 %459 }
  0x96   : > { %vm461_vm3 = vcmp.eq.s32.totalorder %v985_v58, %v460_v17  ;;  %vm462_vm7 = vcmp.eq.s32.totalorder %v988_v59, %v460_v17 }
  0x97   : > { %v482_v15 = vpop.permute.xlu1 %481 }
  0x98   : > { %vm483_vm5 = vcmp.eq.s32.totalorder %v985_v58, %v482_v15  ;;  %vm484_vm9 = vcmp.eq.s32.totalorder %v988_v59, %v482_v15 }
  0x9a   : > { %v493_v19 = vpop.permute.xlu0 %492 }
  0x9b   : > { %vm494_vm13 = vcmp.eq.s32.totalorder %v985_v58, %v493_v19  ;;  %vm495_vm14 = vcmp.eq.s32.totalorder %v988_v59, %v493_v19 }
  0x9c   : > { %v504_v16 = vpop.permute.xlu1 %503 }
  0x9d   : > { %vm505_vm6 = vcmp.eq.s32.totalorder %v985_v58, %v504_v16  ;;  %vm506_vm10 = vcmp.eq.s32.totalorder %v988_v59, %v504_v16 }
  0xa1   : > { %v449_v18 = vpop.permute.xlu1 %448 }
  0xa2   : > { %vm450_vm11 = vcmp.eq.s32.totalorder %v985_v58, %v449_v18  ;;  %vm451_vm12 = vcmp.eq.s32.totalorder %v988_v59, %v449_v18 }
 0x167   : > { %v698_v11 = vpop.f32.mrb[0].mxu0 }
 0x168   : > { %v699_v12 = vpop.f32.mrb[1].mxu0 }
 0x169   : > { %v700_v13 = vadd.f32 %v699_v12, %v698_v11 }
 0x16b   : > { %659 = vmatmul.mubr.msk.f32.vlgmr.msra.gmra.mrb[0].mxu1 %vm371_vm2, %v700_v13  ;;  %v549_v13 = vadd.s32 %v548_v6, %v547_v2  ;;  %vm553_vm2 = vcmask 7168  }
 0x16d   : > { %vm550_vm1 = vcmp.lt.s32.totalorder %v549_v13, 12 }
 0x23e   : > { %v441_v3 = vpop.f32.mrb[0].mxu1 }
 0x23f   : > { %v443_v20 = vpop.f32.mrb[1].mxu1  ;;  %v474_v21 = vsel %vm472_vm4, %v441_v3, 0.0  ;;  %v463_v22 = vsel %vm461_vm3, %v441_v3, 0.0  ;;  %v507_v23 = vsel %vm505_vm6, %v441_v3, 0.0  ;;  %v485_v24 = vsel %vm483_vm5, %v441_v3, 0.0 }
 0x240   : > { %v475_v25 = vsel %vm473_vm8, %v443_v20, 0.0  ;;  %v464_v26 = vsel %vm462_vm7, %v443_v20, 0.0  ;;  %v508_v27 = vsel %vm506_vm10, %v443_v20, 0.0  ;;  %v486_v28 = vsel %vm484_vm9, %v443_v20, 0.0 }
 0x241   : > { %v476_v29 = vadd.f32 %v475_v25, %v474_v21  ;;  %v465_v30 = vadd.f32 %v464_v26, %v463_v22  ;;  %v509_v31 = vadd.f32 %v508_v27, %v507_v23  ;;  %v487_v32 = vadd.f32 %v486_v28, %v485_v24 }
 0x242   : > { %v496_v33 = vsel %vm494_vm13, %v441_v3, 0.0  ;;  %v497_v34 = vsel %vm495_vm14, %v443_v20, 0.0  ;;  %v452_v35 = vsel %vm450_vm11, %v441_v3, 0.0  ;;  %v453_v36 = vsel %vm451_vm12, %v443_v20, 0.0 }
 0x243   : > { %477 = vadd.xlane.f32.xlu1 %v476_v29  ;;  %466 = vadd.xlane.f32.xlu0 %v465_v30  ;;  %v498_v37 = vadd.f32 %v497_v34, %v496_v33  ;;  %v454_v38 = vadd.f32 %v453_v36, %v452_v35 }
 0x247   : > { %510 = vadd.xlane.f32.xlu1 %v509_v31  ;;  %488 = vadd.xlane.f32.xlu0 %v487_v32 }
 0x24b   : > { %499 = vadd.xlane.f32.xlu0 %v498_v37 }
 0x24f   : > { %455 = vadd.xlane.f32.xlu0 %v454_v38 }
 0x2d0   : > { %v467_v39 = vpop.xlane.xlu0 %466  ;;  %v478_v40 = vpop.xlane.xlu1 %477 }
 0x2d1   : > { %v479_v42 = vadd.f32 %v478_v40, %v467_v39 }
 0x2d4   : > { %v489_v41 = vpop.xlane.xlu0 %488  ;;  %v511_v46 = vpop.xlane.xlu1 %510 }
 0x2d5   : > { %v490_v43 = vadd.f32 %v489_v41, %v479_v42 }
 0x2d8   : > { %v500_v44 = vpop.xlane.xlu0 %499 }
 0x2d9   : > { %v501_v45 = vadd.f32 %v500_v44, %v490_v43 }
 0x2db   : > { %v512_v47 = vadd.f32 %v511_v46, %v501_v45 }
 0x2dc   : > { %v456_v48 = vpop.xlane.xlu0 %455 }
 0x2dd   : > { %v513_v49 = vsub.f32 0.0, %v512_v47  ;;  %v515_v50 = vand.u32 2147483647, %v456_v48  ;;  %v514_v15 = vmin.f32 %v456_v48, 0.0 }
 0x2df   : > { %v530_v51 = vand.u32 2147483647, %v513_v49  ;;  %v516_v52 = vsub.f32 0.0, %v515_v50  ;;  %v529_v14 = vmin.f32 %v513_v49, 0.0 }
 0x2e1   : > { %v531_v53 = vsub.f32 0.0, %v530_v51  ;;  %v517_v54 = vmul.f32 1.442695, %v516_v52 }
 0x2e3   : > { %v532_v55 = vmul.f32 1.442695, %v531_v53  ;;  %779 = vpow2.f32 %v517_v54 }
 0x2e5   : > { %781 = vpow2.f32 %v532_v55 }
 0x2ed   : > { %v780_v56 = vpop.eup %779 }
 0x2ee   : > { %v519_v58 = vadd.f32 1.0, %v780_v56  ;;  %v522_v61 = vmul.f32 -0.5, %v780_v56  ;;  %v525_v0 = vand.u32 2147483647, %v780_v56 }
 0x2ef   : > { %v782_v59 = vpop.eup %781 }
 0x2f0   : > { %783 = vlog2.f32 %v519_v58  ;;  %v534_v60 = vadd.f32 1.0, %v782_v59  ;;  %v537_v62 = vmul.f32 -0.5, %v782_v59  ;;  %v523_v63 = vadd.f32 1.0, %v522_v61 }
 0x2f1   : > { %v540_v5 = vand.u32 2147483647, %v782_v59  ;;  %vm526_vm15 = vcmp.lt.f32.partialorder %v525_v0, 0.0004427343 }
 0x2f2   : > { %785 = vlog2.f32 %v534_v60  ;;  %v538_v1 = vadd.f32 1.0, %v537_v62  ;;  %v524_v8 = vmul.f32 %v780_v56, %v523_v63 }
 0x2f3   : > { %vm541_vm0 = vcmp.lt.f32.partialorder %v540_v5, 0.0004427343 }
 0x2f4   : > { %v539_v12 = vmul.f32 %v782_v59, %v538_v1 }
 0x2fa   : > { %v784_v4 = vpop.eup %783 }
 0x2fb   : > { %v521_v7 = vmul.f32 0.6931472, %v784_v4 }
 0x2fc   : > { %v786_v9 = vpop.eup %785 }
 0x2fd   : > { %v527_v10 = vsel %vm526_vm15, %v524_v8, %v521_v7  ;;  %v536_v11 = vmul.f32 0.6931472, %v786_v9 }
 0x2fe   : > { %v528_v17 = vsub.f32 %v514_v15, %v527_v10 }
 0x2ff   : > { %v542_v16 = vsel %vm541_vm0, %v539_v12, %v536_v11 }
 0x300   : > { %v543_v18 = vsub.f32 %v529_v14, %v542_v16 }
 0x302   : > { %v544_v57 = vadd.f32 %v543_v18, %v528_v17 }
 0x304   : > { %v551_v19 = vsel %vm550_vm1, %v544_v57, 0.0 }
 0x305   : > { %v554_v3 = vsel %vm553_vm2, %v551_v19, 0.0 }
 0x306   : > { %555 = vadd.xlane.f32.xlu1 %v554_v3 }
 0x393   : > { %v556_v20 = vpop.xlane.xlu1 %555 }
 0x394   : > { %v557_v21 = vrot.slane %v556_v20, 4 }
 0x396   : > { %v558_v22 = vadd.f32 %v557_v21, %v556_v20 }
 0x398   : > { %v559_v23 = vrot.slane %v558_v22, 2 }
 0x39a   : > { %v560_v24 = vadd.f32 %v559_v23, %v558_v22 }
 0x39c   : > { %v561_v25 = vrot.slane %v560_v24, 1 }
 0x39e   : > { %v562_v26 = vadd.f32 %v561_v25, %v560_v24 }
 0x3a0   : > { %741 = vpush %v562_v26 }
 0x3d1   : > { %s742_s24 = spop %741 }
 0x3d2   : > { %s564_s25 = sadd.f32 %s742_s24, %s552_s23 }
 0x3d4   : > { %566 = sst [smem:[#allocation2]] %s564_s25 }
 0x3d5   : > { %s572_s26 = ssub.f32 0.0, %s564_s25 }
 0x3d7   : > { %s575_s27 = smul.f32 0.083333336, %s572_s26 }
 0x3d9   : > { %746 = sst [smem:[#allocation3]] (%p752_p5), %s575_s27 }
 0x3da   : > { %798 = shalt.err (!%p795_p10)
}
 0x3db   : > { %s819_s10 = smov [#allocation3]  }
 0x3dc   : > { %748 = dma.smem_to_hbm (%p752_p5), %s819_s10, 16, %s1067_s5, [#allocation4]  }
 0x3dd   : > { %804 = dma.done.wait (%p752_p5), [#allocation4], 16  }
 0x3de   : > { %806 = vsyncadd (%p752_p5), [#allocation4], 4294967280 }
 0x3df   : > { %591 = sfence }
 0x3e0 PF: > { %s16_s18 = sadd.s32 1, %s809_s18  }
 0x3e1   : > { %p13_p11 = scmp.ge.s32.totalorder %s16_s18, 4  }
 0x3e3   :  { %15 = sbr.rel (!%p13_p11) target bundleno = 1 (0x1), region = 84 }
 0x3ea   :  { %597 = vsyncpa [#allocation4], 1 }
 0x3eb   :  { %599 = vsyncpa [#allocation4 + $0x1], 1 }

</bundles_post_ra>
